<compile_context>
chip_gen: v7x
topology: tpu7x:2x2x1
jax: 0.10.0
libtpu: 0.0.40
codegen_flags: <defaults>
</compile_context>

<pallas_src>
import jax
import jax.numpy as jnp
from jax.experimental import pallas as pl
from jax.experimental.pallas import tpu as pltpu

# `columns` is external in the source file; pick a small deterministic value.
COLUMNS = 32
LAY1 = COLUMNS          # 32
LAY2 = COLUMNS + 50     # 82
LAY3 = COLUMNS + 100    # 132


def _round_up(x, m):
    return ((x + m - 1) // m) * m


# Lane-aligned hidden widths (VMEM-only; never hit HBM-facing streams).
P_H2 = _round_up(LAY2, 128)    # 128
P_H3 = _round_up(LAY3, 128)    # 256


def _sae_kernel(x_ref,
                w1_ref, b1_ref,
                w2_ref, b2_ref,
                w3_ref, b3_ref,
                w4_ref, b4_ref,
                o_ref):
    """One batch tile per grid step; resident bf16 weights, f32 accumulate."""
    # Narrow (TB, 32) f32 input stream; cast to bf16 for the MXU in-kernel.
    x = x_ref[...].astype(jnp.bfloat16)

    # encoder1: Linear(lay1 -> lay2) + ReLU   (Dropout == identity in eval)
    h = jnp.dot(x, w1_ref[...], preferred_element_type=jnp.float32) + b1_ref[...]
    h = jnp.maximum(h, 0.0)

    # encoder2: Linear(lay2 -> lay3) + ReLU
    h = jnp.dot(h.astype(jnp.bfloat16), w2_ref[...],
                preferred_element_type=jnp.float32) + b2_ref[...]
    h = jnp.maximum(h, 0.0)

    # decoder1: Linear(lay3 -> lay2) + ReLU
    h = jnp.dot(h.astype(jnp.bfloat16), w3_ref[...],
                preferred_element_type=jnp.float32) + b3_ref[...]
    h = jnp.maximum(h, 0.0)

    # decoder2: Linear(lay2 -> lay1) + ReLU; stored directly at 32 lanes wide
    # (masked vst, but 4x fewer HBM write bytes and no post-kernel slice pass).
    h = jnp.dot(h.astype(jnp.bfloat16), w4_ref[...],
                preferred_element_type=jnp.float32) + b4_ref[...]
    h = jnp.maximum(h, 0.0)

    o_ref[...] = h.astype(o_ref.dtype)


def prepare_params(params):
    """One-time prep: transpose to (in, out), zero-pad hidden dims, cast.

    Weights -> bf16 (MXU operands); biases -> f32 rows (1, out).
    w1 keeps its true K=32 input width; w4 keeps its true N=32 output width.
    Call once and reuse; keeps transposes/pads out of the per-call path.
    """
    def prep_w(w, in_pad, out_pad):
        w_t = jnp.asarray(w, jnp.float32).T                 # (in, out)
        w_p = jnp.zeros((in_pad, out_pad), jnp.float32)
        w_p = w_p.at[: w_t.shape[0], : w_t.shape[1]].set(w_t)
        return w_p.astype(jnp.bfloat16)

    def prep_b(b, out_pad):
        b = jnp.asarray(b, jnp.float32)
        b_p = jnp.zeros((1, out_pad), jnp.float32)
        return b_p.at[0, : b.shape[0]].set(b)

    return (
        prep_w(params["w1"], LAY1, P_H2), prep_b(params["b1"], P_H2),   # 32 x 128
        prep_w(params["w2"], P_H2, P_H3), prep_b(params["b2"], P_H3),   # 128 x 256
        prep_w(params["w3"], P_H3, P_H2), prep_b(params["b3"], P_H2),   # 256 x 128
        prep_w(params["w4"], P_H2, LAY1), prep_b(params["b4"], LAY1),   # 128 x 32
    )


def _choose_tile_batch(B, tb_max):
    """Batch tile: multiple of 16, <= tb_max, and >= 2 grid steps when B allows
    (so v7x can shard the 'parallel' batch axis over both TensorCores)."""
    tb_max = max(16, (tb_max // 16) * 16)
    half = _round_up(pl.cdiv(B, 2), 16)
    return max(16, min(tb_max, half))


def stacked_autoencoder_forward(x, prepared, *, tb_max=1024):
    """x: (B, LAY1) float32. prepared: output of prepare_params()."""
    B = x.shape[0]
    TB = _choose_tile_batch(B, tb_max)
    grid = (pl.cdiv(B, TB),)   # last block may overrun; output writes are masked

    w1, b1, w2, b2, w3, b3, w4, b4 = prepared

    def _resident(shape):
        # Grid-invariant: DMA'd once, stays in VMEM for the whole grid.
        # TODO(synk): pipeline_mode=pl.Buffered(1) would drop the unused second
        # pipeline buffer (~200 KB VMEM); omitted for lowering compatibility.
        return pl.BlockSpec(shape, lambda i: (0, 0))

    in_specs = [
        pl.BlockSpec((TB, LAY1), lambda i: (i, 0)),          # x tile (f32, 32 wide)
        _resident((LAY1, P_H2)), _resident((1, P_H2)),
        _resident((P_H2, P_H3)), _resident((1, P_H3)),
        _resident((P_H3, P_H2)), _resident((1, P_H2)),
        _resident((P_H2, LAY1)), _resident((1, LAY1)),
    ]
    out_spec = pl.BlockSpec((TB, LAY1), lambda i: (i, 0))    # out tile (f32, 32 wide)

    w_bytes = (w1.size + w2.size + w3.size + w4.size) * 2
    b_bytes = (b1.size + b2.size + b3.size + b4.size) * 4
    flops = 2 * B * (LAY1 * P_H2 + P_H2 * P_H3 + P_H3 * P_H2 + P_H2 * LAY1)
    bytes_accessed = B * LAY1 * 4 + B * LAY1 * 4 + w_bytes + b_bytes

    # VMEM budget: double-buffered x/out tiles + f32 activations + resident
    # weights.  Only matters for very large TB on v7x (64 MiB physical).
    vmem_bytes = (
        2 * TB * LAY1 * 4 + 2 * TB * LAY1 * 4
        + TB * (P_H2 + P_H3 + P_H2 + LAY1) * 4
        + w_bytes + b_bytes)
    vmem_limit = int(min(max(2 * vmem_bytes, 32 << 20), 60 << 20))

    return pl.pallas_call(
        _sae_kernel,
        out_shape=jax.ShapeDtypeStruct((B, LAY1), jnp.float32),
        grid=grid,
        in_specs=in_specs,
        out_specs=out_spec,
        compiler_params=pltpu.CompilerParams(
            dimension_semantics=("parallel",),
            vmem_limit_bytes=vmem_limit),
        cost_estimate=pl.CostEstimate(
            flops=flops, transcendentals=0, bytes_accessed=bytes_accessed),
    )(x, w1, b1, w2, b2, w3, b3, w4, b4)


def init_params(key):
    """Deterministic init with shapes matching nn.Linear of the module."""
    ks = jax.random.split(key, 8)

    def linear_init(kw, kb, out_f, in_f):
        # PyTorch default: U(-1/sqrt(in), 1/sqrt(in))
        bound = 1.0 / jnp.sqrt(jnp.float32(in_f))
        w = jax.random.uniform(kw, (out_f, in_f), jnp.float32, -bound, bound)
        b = jax.random.uniform(kb, (out_f,), jnp.float32, -bound, bound)
        return w, b

    w1, b1 = linear_init(ks[0], ks[1], LAY2, LAY1)   # encoder1
    w2, b2 = linear_init(ks[2], ks[3], LAY3, LAY2)   # encoder2
    w3, b3 = linear_init(ks[4], ks[5], LAY2, LAY3)   # decoder1
    w4, b4 = linear_init(ks[6], ks[7], LAY1, LAY2)   # decoder2
    return dict(w1=w1, b1=b1, w2=w2, b2=b2, w3=w3, b3=b3, w4=w4, b4=b4)


def _reference_forward(x, p):
    """Plain-JAX f32 reference mirroring PyTorch semantics (eval mode)."""
    h = jnp.maximum(x @ p["w1"].T + p["b1"], 0.0)
    h = jnp.maximum(h @ p["w2"].T + p["b2"], 0.0)
    h = jnp.maximum(h @ p["w3"].T + p["b3"], 0.0)
    h = jnp.maximum(h @ p["w4"].T + p["b4"], 0.0)
    return h


if __name__ == "__main__":
    key = jax.random.PRNGKey(0)
    k_params, k_x = jax.random.split(key)

    params = init_params(k_params)
    prepared = prepare_params(params)

    # B not a multiple of the tile: exercises the masked final block and a
    # multi-step pipelined grid (tb_max=64 -> TB=64, grid=(4,)).
    B = 200
    x = jax.random.normal(k_x, (B, LAY1), dtype=jnp.float32)

    out = stacked_autoencoder_forward(x, prepared, tb_max=64)
    out = jax.block_until_ready(out)

    ref = _reference_forward(x, params)
    assert out.shape == (B, LAY1), out.shape
    # bf16 MXU operands -> loosen tolerance vs the f32 reference.
    assert jnp.allclose(out, ref, atol=5e-2, rtol=5e-2), "mismatch vs reference"

    print("KERNEL_OK")
</pallas_src>

<mosaic_0001>
module attributes {stable_mosaic.version = 11 : i64} {
  func.func @_sae_kernel(%arg0: i32, %arg1: memref<64x32xf32, #tpu.memory_space<vmem>>, %arg2: memref<32x128xbf16, #tpu.memory_space<vmem>>, %arg3: memref<1x128xf32, #tpu.memory_space<vmem>>, %arg4: memref<128x256xbf16, #tpu.memory_space<vmem>>, %arg5: memref<1x256xf32, #tpu.memory_space<vmem>>, %arg6: memref<256x128xbf16, #tpu.memory_space<vmem>>, %arg7: memref<1x128xf32, #tpu.memory_space<vmem>>, %arg8: memref<128x32xbf16, #tpu.memory_space<vmem>>, %arg9: memref<1x32xf32, #tpu.memory_space<vmem>>, %arg10: memref<64x32xf32, #tpu.memory_space<vmem>>) attributes {dimension_semantics = [#tpu.dimension_semantics<parallel>], iteration_bounds = array<i64: 4>, scalar_prefetch = 0 : i64, scratch_operands = 0 : i64, tpu.core_type = #tpu.core_type<tc>, window_params = [{transform_indices = @transform_0, window_bounds = array<i64: 64, 32>}, {pipeline_mode = #tpu.pipeline_mode<synchronous>, transform_indices = @transform_1, window_bounds = array<i64: 32, 128>}, {pipeline_mode = #tpu.pipeline_mode<synchronous>, transform_indices = @transform_2, window_bounds = array<i64: 1, 128>}, {pipeline_mode = #tpu.pipeline_mode<synchronous>, transform_indices = @transform_3, window_bounds = array<i64: 128, 256>}, {pipeline_mode = #tpu.pipeline_mode<synchronous>, transform_indices = @transform_4, window_bounds = array<i64: 1, 256>}, {pipeline_mode = #tpu.pipeline_mode<synchronous>, transform_indices = @transform_5, window_bounds = array<i64: 256, 128>}, {pipeline_mode = #tpu.pipeline_mode<synchronous>, transform_indices = @transform_6, window_bounds = array<i64: 1, 128>}, {pipeline_mode = #tpu.pipeline_mode<synchronous>, transform_indices = @transform_7, window_bounds = array<i64: 128, 32>}, {pipeline_mode = #tpu.pipeline_mode<synchronous>, transform_indices = @transform_8, window_bounds = array<i64: 1, 32>}, {transform_indices = @transform_9, window_bounds = array<i64: 64, 32>}]} {
    %c0 = arith.constant 0 : index
    %c0_0 = arith.constant 0 : index
    %0 = vector.load %arg1[%c0, %c0_0] : memref<64x32xf32, #tpu.memory_space<vmem>>, vector<64x32xf32>
    %1 = arith.truncf %0 : vector<64x32xf32> to vector<64x32xbf16>
    %c0_1 = arith.constant 0 : index
    %c0_2 = arith.constant 0 : index
    %2 = vector.load %arg2[%c0_1, %c0_2] : memref<32x128xbf16, #tpu.memory_space<vmem>>, vector<32x128xbf16>
    %cst = arith.constant dense<0.000000e+00> : vector<64x128xf32>
    %3 = tpu.matmul %1, %2, %cst {dimension_numbers = #tpu.dot_dimension_numbers<[1], [0], [0], [1], [0, 0, 1, 1], [], []>} : vector<64x32xbf16>, vector<32x128xbf16>, vector<64x128xf32> -> vector<64x128xf32>
    %c0_3 = arith.constant 0 : index
    %c0_4 = arith.constant 0 : index
    %4 = vector.load %arg3[%c0_3, %c0_4] : memref<1x128xf32, #tpu.memory_space<vmem>>, vector<1x128xf32>
    %5 = vector.broadcast %4 : vector<1x128xf32> to vector<64x128xf32>
    %6 = arith.addf %3, %5 : vector<64x128xf32>
    %cst_5 = arith.constant 0.000000e+00 : f32
    %7 = vector.broadcast %cst_5 : f32 to vector<64x128xf32>
    %8 = arith.maximumf %6, %7 : vector<64x128xf32>
    %9 = arith.truncf %8 : vector<64x128xf32> to vector<64x128xbf16>
    %c0_6 = arith.constant 0 : index
    %c0_7 = arith.constant 0 : index
    %10 = vector.load %arg4[%c0_6, %c0_7] : memref<128x256xbf16, #tpu.memory_space<vmem>>, vector<128x256xbf16>
    %cst_8 = arith.constant dense<0.000000e+00> : vector<64x256xf32>
    %11 = tpu.matmul %9, %10, %cst_8 {dimension_numbers = #tpu.dot_dimension_numbers<[1], [0], [0], [1], [0, 0, 1, 1], [], []>} : vector<64x128xbf16>, vector<128x256xbf16>, vector<64x256xf32> -> vector<64x256xf32>
    %c0_9 = arith.constant 0 : index
    %c0_10 = arith.constant 0 : index
    %12 = vector.load %arg5[%c0_9, %c0_10] : memref<1x256xf32, #tpu.memory_space<vmem>>, vector<1x256xf32>
    %13 = vector.broadcast %12 : vector<1x256xf32> to vector<64x256xf32>
    %14 = arith.addf %11, %13 : vector<64x256xf32>
    %cst_11 = arith.constant 0.000000e+00 : f32
    %15 = vector.broadcast %cst_11 : f32 to vector<64x256xf32>
    %16 = arith.maximumf %14, %15 : vector<64x256xf32>
    %17 = arith.truncf %16 : vector<64x256xf32> to vector<64x256xbf16>
    %c0_12 = arith.constant 0 : index
    %c0_13 = arith.constant 0 : index
    %18 = vector.load %arg6[%c0_12, %c0_13] : memref<256x128xbf16, #tpu.memory_space<vmem>>, vector<256x128xbf16>
    %cst_14 = arith.constant dense<0.000000e+00> : vector<64x128xf32>
    %19 = tpu.matmul %17, %18, %cst_14 {dimension_numbers = #tpu.dot_dimension_numbers<[1], [0], [0], [1], [0, 0, 1, 1], [], []>} : vector<64x256xbf16>, vector<256x128xbf16>, vector<64x128xf32> -> vector<64x128xf32>
    %c0_15 = arith.constant 0 : index
    %c0_16 = arith.constant 0 : index
    %20 = vector.load %arg7[%c0_15, %c0_16] : memref<1x128xf32, #tpu.memory_space<vmem>>, vector<1x128xf32>
    %21 = vector.broadcast %20 : vector<1x128xf32> to vector<64x128xf32>
    %22 = arith.addf %19, %21 : vector<64x128xf32>
    %cst_17 = arith.constant 0.000000e+00 : f32
    %23 = vector.broadcast %cst_17 : f32 to vector<64x128xf32>
    %24 = arith.maximumf %22, %23 : vector<64x128xf32>
    %25 = arith.truncf %24 : vector<64x128xf32> to vector<64x128xbf16>
    %c0_18 = arith.constant 0 : index
    %c0_19 = arith.constant 0 : index
    %26 = vector.load %arg8[%c0_18, %c0_19] : memref<128x32xbf16, #tpu.memory_space<vmem>>, vector<128x32xbf16>
    %cst_20 = arith.constant dense<0.000000e+00> : vector<64x32xf32>
    %27 = tpu.matmul %25, %26, %cst_20 {dimension_numbers = #tpu.dot_dimension_numbers<[1], [0], [0], [1], [0, 0, 1, 1], [], []>} : vector<64x128xbf16>, vector<128x32xbf16>, vector<64x32xf32> -> vector<64x32xf32>
    %c0_21 = arith.constant 0 : index
    %c0_22 = arith.constant 0 : index
    %28 = vector.load %arg9[%c0_21, %c0_22] : memref<1x32xf32, #tpu.memory_space<vmem>>, vector<1x32xf32>
    %29 = vector.broadcast %28 : vector<1x32xf32> to vector<64x32xf32>
    %30 = arith.addf %27, %29 : vector<64x32xf32>
    %cst_23 = arith.constant 0.000000e+00 : f32
    %31 = vector.broadcast %cst_23 : f32 to vector<64x32xf32>
    %32 = arith.maximumf %30, %31 : vector<64x32xf32>
    %c0_24 = arith.constant 0 : index
    %c0_25 = arith.constant 0 : index
    %33 = vector.load %arg10[%c0_24, %c0_25] : memref<64x32xf32, #tpu.memory_space<vmem>>, vector<64x32xf32>
    tpu.vector_store %arg10[%c0_24, %c0_25], %32 {strides = array<i32>} : memref<64x32xf32, #tpu.memory_space<vmem>>, vector<64x32xf32>,
    return
  }
  func.func @transform_0(%arg0: i32) -> (i32, i32) {
    %c0_i32 = arith.constant 0 : i32
    %c0_i32_0 = arith.constant 0 : i32
    return %arg0, %c0_i32 : i32, i32
  }
  func.func @transform_1(%arg0: i32) -> (i32, i32) {
    %c0_i32 = arith.constant 0 : i32
    %c0_i32_0 = arith.constant 0 : i32
    %c0_i32_1 = arith.constant 0 : i32
    return %c0_i32, %c0_i32_0 : i32, i32
  }
  func.func @transform_2(%arg0: i32) -> (i32, i32) {
    %c0_i32 = arith.constant 0 : i32
    %c0_i32_0 = arith.constant 0 : i32
    %c0_i32_1 = arith.constant 0 : i32
    return %c0_i32, %c0_i32_0 : i32, i32
  }
  func.func @transform_3(%arg0: i32) -> (i32, i32) {
    %c0_i32 = arith.constant 0 : i32
    %c0_i32_0 = arith.constant 0 : i32
    %c0_i32_1 = arith.constant 0 : i32
    return %c0_i32, %c0_i32_0 : i32, i32
  }
  func.func @transform_4(%arg0: i32) -> (i32, i32) {
    %c0_i32 = arith.constant 0 : i32
    %c0_i32_0 = arith.constant 0 : i32
    %c0_i32_1 = arith.constant 0 : i32
    return %c0_i32, %c0_i32_0 : i32, i32
  }
  func.func @transform_5(%arg0: i32) -> (i32, i32) {
    %c0_i32 = arith.constant 0 : i32
    %c0_i32_0 = arith.constant 0 : i32
    %c0_i32_1 = arith.constant 0 : i32
    return %c0_i32, %c0_i32_0 : i32, i32
  }
  func.func @transform_6(%arg0: i32) -> (i32, i32) {
    %c0_i32 = arith.constant 0 : i32
    %c0_i32_0 = arith.constant 0 : i32
    %c0_i32_1 = arith.constant 0 : i32
    return %c0_i32, %c0_i32_0 : i32, i32
  }
  func.func @transform_7(%arg0: i32) -> (i32, i32) {
    %c0_i32 = arith.constant 0 : i32
    %c0_i32_0 = arith.constant 0 : i32
    %c0_i32_1 = arith.constant 0 : i32
    return %c0_i32, %c0_i32_0 : i32, i32
  }
  func.func @transform_8(%arg0: i32) -> (i32, i32) {
    %c0_i32 = arith.constant 0 : i32
    %c0_i32_0 = arith.constant 0 : i32
    %c0_i32_1 = arith.constant 0 : i32
    return %c0_i32, %c0_i32_0 : i32, i32
  }
  func.func @transform_9(%arg0: i32) -> (i32, i32) {
    %c0_i32 = arith.constant 0 : i32
    %c0_i32_0 = arith.constant 0 : i32
    return %arg0, %c0_i32 : i32, i32
  }
}

</mosaic_0001>

<bundles_post_ra>
// kernel: tpu_custom_call.1
= control target key start
LH: loop header
LB: loop body
LE: loop exit
PB: predicated region body
PF: predicated region fallthrough
CT: control target
= control target key end

     0   :  { %s1740_s30 = smov 0   ;;  %s1742_s10 = smov 0   ;;  %s1999_s0 = inlined_call_operand.vmem [shape: f32[200,32], index: 0, kind: input, shape index: {}]   ;;  %s2000_s1 = inlined_call_operand.vmem [shape: bf16[32,128], index: 1, kind: input, shape index: {}]   ;;  %s2001_s2 = inlined_call_operand.vmem [shape: f32[1,128], index: 2, kind: input, shape index: {}]   ;;  %s2002_s3 = inlined_call_operand.vmem [shape: bf16[128,256], index: 3, kind: input, shape index: {}]   ;;  %s2003_s4 = inlined_call_operand.vmem [shape: f32[1,256], index: 4, kind: input, shape index: {}]   ;;  %s2004_s5 = inlined_call_operand.vmem [shape: bf16[256,128], index: 5, kind: input, shape index: {}]   ;;  %s2005_s6 = inlined_call_operand.vmem [shape: f32[1,128], index: 6, kind: input, shape index: {}]   ;;  %s2006_s7 = inlined_call_operand.vmem [shape: bf16[128,32], index: 7, kind: input, shape index: {}]   ;;  %s2007_s8 = inlined_call_operand.vmem [shape: f32[1,32], index: 8, kind: input, shape index: {}]   ;;  %s2008_s9 = inlined_call_operand.vmem [shape: f32[200,32], index: 9, kind: output, shape index: {}]  }
   0x1   :  { %s1744_s11 = smov 0  }
   0x2 LB: > { %s1753_s12 = sadd.s32 4294967295, %s1655_s11   ;;  %s1755_s13 = sadd.s32 1, %s1655_s11   ;;  %s1655_s11 = sphi %s1744_s11, %s2015_s11   ;;  %s1651_s10 = sphi %s1742_s10, %s2014_s10   ;;  %s1647_s30 = sphi %s1740_s30, %s2013_s30  }
   0x3   : > { %s217_s14 = ssub.s32 %s1655_s11, %s1755_s13  ;;  %s220_s15 = sadd.s32 1, %s1651_s10 }
   0x4   : > { %p218_p0 = scmp.eq.s32.totalorder %s217_s14, 0  ;;  %p230_p1 = scmp.ne.s32.totalorder %s1651_s10, %s1647_s30 }
   0x5   : > { %p231_p2 = scmp.eq.s32.totalorder %s1753_s12, 3  ;;  %p1295_p3 = scmp.ge.s32.totalorder %s1655_s11, 1 }
   0x6   : > { %s1763_s16 = scalar_select %p218_p0, %s1651_s10, %s220_s15  }
   0x7   : > { %p1765_p4 = por %p231_p2, %p230_p1  ;;  %p296_p5 = scmp.lt.s32.totalorder %s1655_s11, 5 }
   0x9   : > { %p297_p6 = pnand %p1295_p3, %p296_p5 }
   0xa   : > { %v1551_v0 = vld [vmem:[%s2000_s1] sm:$0xff] (!%p297_p6)   ;;  %s1773_s20 = sshll.u32 (!%p297_p6), %s1753_s12, 3  ;;  %v1552_v1 = vld [vmem:[%s2000_s1 + $0x8] sm:$0xff] (!%p297_p6)   ;;  %v1556_v4 = vld [vmem:[%s2002_s3 + $0x14] ss:$8 sps:$4 sm:$0xff] (!%p297_p6)   ;;  %vm390_vm0 = vcmask (!%p297_p6), 261120  }
   0xb   : > { %300 = sbr.rel (%p297_p6) target bundleno = 985 (0x3d9), region = 56  ;;  %p340_p7 = scmp.lt.s32.totalorder (!%p297_p6), %s1773_s20, 24  ;;  %1426 = vmatprep.subr.bf16.mxu0 (!%p297_p6), %v1551_v0  ;;  %v1553_v2 = vld [vmem:[%s2002_s3 + $0x4] ss:$8 sps:$4 sm:$0xff] (!%p297_p6)   ;;  %v1555_v3 = vld [vmem:[%s2002_s3] ss:$8 sps:$4 sm:$0xff] (!%p297_p6)  }
   0xc   : > { %1427 = vmatpush3.bf16.msra.mxu0 (!%p297_p6), %v1551_v0  ;;  %588 = vmatprep.subr.bf16.mxu1 (!%p297_p6), %v1553_v2  ;;  %v1558_v5 = vld [vmem:[%s2002_s3 + $0x10] ss:$8 sps:$4 sm:$0xff] (!%p297_p6)   ;;  %v1559_v6 = vld [vmem:[%s2002_s3 + $0x24] ss:$8 sps:$4 sm:$0xff] (!%p297_p6)   ;;  %v1561_v16 = vld [vmem:[%s2002_s3 + $0x20] ss:$8 sps:$4 sm:$0xff] (!%p297_p6)  }
   0xd   : > { %1428 = vmatprep.subr.bf16.mxu0 (!%p297_p6), %v1552_v1  ;;  %589 = vmatpush1.bf16.msra.mxu1 (!%p297_p6), %v1555_v3  ;;  %v1562_v17 = vld [vmem:[%s2002_s3 + $0x34] ss:$8 sps:$4 sm:$0xff] (!%p297_p6)   ;;  %v1564_v20 = vld [vmem:[%s2002_s3 + $0x30] ss:$8 sps:$4 sm:$0xff] (!%p297_p6)   ;;  %v1565_v21 = vld [vmem:[%s2002_s3 + $0x44] ss:$8 sps:$4 sm:$0xff] (!%p297_p6)  }
   0xe   : > { %590 = vmatprep.subr.bf16.mxu1 (!%p297_p6), %v1556_v4  ;;  %v1567_v23 = vld [vmem:[%s2002_s3 + $0x40] ss:$8 sps:$4 sm:$0xff] (!%p297_p6)   ;;  %v1568_v24 = vld [vmem:[%s2002_s3 + $0x54] ss:$8 sps:$4 sm:$0xff] (!%p297_p6)   ;;  %v1570_v25 = vld [vmem:[%s2002_s3 + $0x50] ss:$8 sps:$4 sm:$0xff] (!%p297_p6)  }
   0xf   : > { %v1571_v26 = vld [vmem:[%s2002_s3 + $0x64] ss:$8 sps:$4 sm:$0xff] (!%p297_p6)   ;;  %v1573_v27 = vld [vmem:[%s2002_s3 + $0x60] ss:$8 sps:$4 sm:$0xff] (!%p297_p6)   ;;  %v1574_v28 = vld [vmem:[%s2002_s3 + $0x74] ss:$8 sps:$4 sm:$0xff] (!%p297_p6)  }
  0x10   : > { %1429 = vmatpush3.bf16.msra.mxu0 (!%p297_p6), %v1552_v1  ;;  %v1576_v29 = vld [vmem:[%s2002_s3 + $0x70] ss:$8 sps:$4 sm:$0xff] (!%p297_p6)   ;;  %v1689_v30 = vmov (!%p297_p6), 0   ;;  %v1577_v31 = vld [vmem:[%s2004_s5 + $0x40] sm:$0xff] (!%p297_p6)   ;;  %v1579_v33 = vld [vmem:[%s2004_s5 + $0x48] sm:$0xff] (!%p297_p6)  }
  0x11   : > { %591 = vmatpush1.bf16.msra.mxu1 (!%p297_p6), %v1558_v5  ;;  %620 = vmatprep.mubr.bf16.mxu1 (!%p297_p6), %v1689_v30  ;;  %v1578_v32 = vld [vmem:[%s2004_s5] sm:$0xff] (!%p297_p6)   ;;  %v1580_v34 = vld [vmem:[%s2004_s5 + $0x8] sm:$0xff] (!%p297_p6)   ;;  %v1581_v35 = vld [vmem:[%s2004_s5 + $0x50] sm:$0xff] (!%p297_p6)  }
  0x12   : > { %s341_s25 = scalar_select %p340_p7, %s1773_s20, 24  ;;  %592 = vmatprep.subr.bf16.mxu1 %v1559_v6  ;;  %1374 = vmatprep.subr.bf16.mxu0 %v1577_v31  ;;  %v1582_v36 = vld [vmem:[%s2004_s5 + $0x10] sm:$0xff]   ;;  %v1583_v37 = vld [vmem:[%s2004_s5 + $0x58] sm:$0xff]   ;;  %v1585_v39 = vld [vmem:[%s2004_s5 + $0x60] sm:$0xff]  }
  0x13   : > { %v1584_v38 = vld [vmem:[%s2004_s5 + $0x18] sm:$0xff]   ;;  %v1586_v40 = vld [vmem:[%s2004_s5 + $0x20] sm:$0xff]   ;;  %v1587_v41 = vld [vmem:[%s2004_s5 + $0x68] sm:$0xff]   ;;  %s1365_s22 = sshll.u32 (%p1765_p4), %s1753_s12, 6 }
  0x14   : > { %s1298_s11 = sshll.u32 %s341_s25, 3  ;;  %v1299_v42 = vld [vmem:[%s2001_s2] ss:$0 sm:$0xff]  ;;  %s1945_s24 = scalar_lea.vmem (%p1765_p4), %s2008_s9, %s1365_s22  }
  0x15   : > { %s343_s21 = scalar_lea.vmem %s1999_s0, %s1298_s11  ;;  %593 = vmatpush1.bf16.msra.mxu1 %v1561_v16  ;;  %s332_s11 = sand.u32 1, %s1647_s30  }
  0x16   : > { %v355_v7 = vld [vmem:[%s343_s21] sm:$0xff]  ;;  %v356_v8 = vld [vmem:[%s343_s21 + $0x8] sm:$0xff]  ;;  %v357_v9 = vld [vmem:[%s343_s21 + $0x10] sm:$0xff]  ;;  %594 = vmatprep.subr.bf16.mxu1 %v1562_v17  ;;  %s1296_s18 = sshll.u32 %s332_s11, 6  ;;  %s1057_s30 = ssub.s32 (%p1765_p4), 25, %s1773_s20 }
  0x17   : > { %v363_v10 = vpack.c.bf16 %v356_v8, %v355_v7  ;;  %v358_v11 = vld [vmem:[%s343_s21 + $0x18] sm:$0xff]  ;;  %v359_v12 = vld [vmem:[%s343_s21 + $0x20] sm:$0xff]  ;;  %v360_v13 = vld [vmem:[%s343_s21 + $0x28] sm:$0xff]  ;;  %s1920_s19 = scalar_lea.vmem [#allocation2], %s1296_s18   ;;  %p1058_p8 = scmp.lt.s32.totalorder (%p1765_p4), %s1057_s30, 8 }
  0x18   : > { %v364_v14 = vpack.c.bf16 %v358_v11, %v357_v9  ;;  %v365_v15 = vpack.c.bf16 %v360_v13, %v359_v12  ;;  %v361_v18 = vld [vmem:[%s343_s21 + $0x30] sm:$0xff]  ;;  %v362_v19 = vld [vmem:[%s343_s21 + $0x38] sm:$0xff]  ;;  %v1588_v7 = vld [vmem:[%s2004_s5 + $0x28] sm:$0xff]  }
  0x19   : > { %1430 = vmatprep.mubr.msk.bf16.mxu0 %vm390_vm0, %v363_v10  ;;  %v366_v22 = vpack.c.bf16 %v362_v19, %v361_v18  ;;  %595 = vmatpush1.bf16.msra.mxu1 %v1564_v20  ;;  %v1589_v8 = vld [vmem:[%s2004_s5 + $0x70] sm:$0xff]   ;;  %v1591_v10 = vld [vmem:[%s2004_s5 + $0x78] sm:$0xff]   ;;  %v1593_v12 = vld [vmem:[%s2006_s7] sm:$0xff]  }
  0x1a   : > { %1431 = vmatmul.mubr.msk.bf16.vlgmr.msra.gmra.mrb[0].mxu0 %vm390_vm0, %v364_v14  ;;  %596 = vmatprep.subr.bf16.mxu1 %v1565_v21  ;;  %v1590_v9 = vld [vmem:[%s2004_s5 + $0x30] sm:$0xff]   ;;  %v1592_v11 = vld [vmem:[%s2004_s5 + $0x38] sm:$0xff]   ;;  %v1594_v13 = vld [vmem:[%s2006_s7 + $0x8] sm:$0xff]  }
  0x1b   : > { %1434 = vmatprep.mubr.msk.bf16.mxu0 %vm390_vm0, %v365_v15  ;;  %1375 = vmatpush3.bf16.msra.mxu0 %v1578_v32  ;;  %v1595_v14 = vld [vmem:[%s2006_s7 + $0x10] sm:$0xff]   ;;  %v498_v15 = vlaneseq  ;;  %v496_v18 = vld [vmem:[%s2003_s4] sm:$0x3] }
  0x1c   : > { %1376 = vmatprep.subr.bf16.mxu0 %v1579_v33 }
  0x1d   : > { %597 = vmatpush1.bf16.msra.mxu1 %v1567_v23  ;;  %v499_v16 = vshrl.u32 %v498_v15, 7  ;;  %v1597_v15 = vld [vmem:[%s2006_s7 + $0x20] sm:$0xff]  }
  0x1e   : > { %598 = vmatprep.subr.bf16.mxu1 %v1568_v24 }
  0x1f   : > { %1377 = vmatpush3.bf16.msra.mxu0 %v1580_v34  ;;  %v500_v17 = vsub.s32 0, %v499_v16  ;;  %v504_v19 = vsub.s32 1, %v499_v16  ;;  %v1598_v16 = vld [vmem:[%s2006_s7 + $0x28] sm:$0xff]  }
  0x20   : > { %1378 = vmatprep.subr.bf16.mxu0 %v1581_v35 }
  0x21   : > { %599 = vmatpush1.bf16.msra.mxu1 %v1570_v25  ;;  %v501_v20 = vrot.slane %v496_v18, %v500_v17  ;;  %v505_v21 = vrot.slane %v496_v18, %v504_v19  ;;  %v1599_v17 = vld [vmem:[%s2006_s7 + $0x30] sm:$0xff]   ;;  %v1600_v18 = vld [vmem:[%s2006_s7 + $0x38] sm:$0xff]  }
  0x22   : > { %1435 = vmatmul.mubr.msk.bf16.gmra.mrb[4].mxu0 %vm390_vm0, %v366_v22  ;;  %600 = vmatprep.subr.bf16.mxu1 %v1571_v26 }
  0x23   : > { %1379 = vmatpush3.bf16.msra.mxu0 %v1582_v36 }
  0x24   : > { %1380 = vmatprep.subr.bf16.mxu0 %v1583_v37 }
  0x25   : > { %601 = vmatpush1.bf16.msra.mxu1 %v1573_v27 }
  0x26   : > { %602 = vmatprep.subr.bf16.mxu1 %v1574_v28 }
  0x27   : > { %1381 = vmatpush3.bf16.msra.mxu0 %v1584_v38 }
  0x28   : > { %1382 = vmatprep.subr.bf16.mxu0 %v1585_v39 }
  0x29   : > { %603 = vmatpush1.bf16.msra.mxu1 %v1576_v29 }
  0x2a   : > { %1438 = vmatprep.subr.bf16.mxu1 %v1593_v12 }
  0x2b   : > { %1383 = vmatpush3.bf16.msra.mxu0 %v1586_v40 }
  0x2c   : > { %1384 = vmatprep.subr.bf16.mxu0 %v1587_v41 }
  0x2f   : > { %1385 = vmatpush3.bf16.msra.mxu0 %v1588_v7 }
  0x30   : > { %1386 = vmatprep.subr.bf16.mxu0 %v1589_v8 }
  0x33   : > { %1387 = vmatpush3.bf16.msra.mxu0 %v1590_v9 }
  0x34   : > { %1388 = vmatprep.subr.bf16.mxu0 %v1591_v10 }
  0x37   : > { %1389 = vmatpush3.bf16.msra.mxu0 %v1592_v11 }
  0xed   : > { %v1432_v43 = vpop.f32.mrb[0].mxu0 }
  0xee   : > { %v446_v44 = vadd.f32 %v1432_v43, %v1299_v42  ;;  %v437_v45 = vpop.f32.mrb[1].mxu0 }
  0xef   : > { %v438_v46 = vadd.f32 %v1299_v42, %v437_v45  ;;  %v1433_v47 = vpop.f32.mrb[2].mxu0 }
  0xf0   : > { %v449_v48 = vadd.f32 %v1433_v47, %v1299_v42  ;;  %v440_v49 = vpop.f32.mrb[3].mxu0  ;;  %v470_v51 = vmax.f32 %v446_v44, 0.0 }
  0xf1   : > { %v441_v50 = vadd.f32 %v1299_v42, %v440_v49  ;;  %v468_v53 = vmax.f32 %v438_v46, 0.0 }
  0xf2   : > { %v471_v52 = vmax.f32 %v449_v48, 0.0 }
  0xf3   : > { %v469_v54 = vmax.f32 %v441_v50, 0.0 }
  0xf4   : > { %v477_v55 = vpack.c.bf16 %v471_v52, %v470_v51 }
  0xf5   : > { %v476_v56 = vpack.c.bf16 %v469_v54, %v468_v53  ;;  %v1436_v57 = vpop.f32.mrb[4].mxu0 }
  0xf6   : > { %v462_v58 = vadd.f32 %v1436_v57, %v1299_v42  ;;  %v453_v59 = vpop.f32.mrb[5].mxu0 }
  0xf7   : > { %621 = vmatmul.mubr.bf16.vlgmr.msra.gmra.mrb[0].mxu1 %v476_v56  ;;  %v454_v60 = vadd.f32 %v1299_v42, %v453_v59  ;;  %v1437_v61 = vpop.f32.mrb[6].mxu0 }
  0xf8   : > { %v474_v62 = vmax.f32 %v462_v58, 0.0  ;;  %v465_v63 = vadd.f32 %v1437_v61, %v1299_v42  ;;  %v456_v0 = vpop.f32.mrb[7].mxu0  ;;  %630 = vmatprep.mubr.bf16.mxu1 %v1689_v30  ;;  %1439 = vmatpush3.bf16.msra.mxu1 %v1593_v12 }
  0xf9   : > { %v472_v1 = vmax.f32 %v454_v60, 0.0  ;;  %v457_v2 = vadd.f32 %v1299_v42, %v456_v0  ;;  %1440 = vmatprep.subr.bf16.mxu1 %v1594_v13 }
  0xfa   : > { %v475_v3 = vmax.f32 %v465_v63, 0.0 }
  0xfb   : > { %v473_v4 = vmax.f32 %v457_v2, 0.0 }
  0xfc   : > { %v479_v5 = vpack.c.bf16 %v475_v3, %v474_v62  ;;  %1441 = vmatpush3.bf16.msra.mxu1 %v1594_v13 }
  0xfd   : > { %v478_v6 = vpack.c.bf16 %v473_v4, %v472_v1  ;;  %1442 = vmatprep.subr.bf16.mxu1 %v1595_v14 }
  0xff   : > { %631 = vmatmul.mubr.bf16.gmra.mrb[4].mxu1 %v477_v55 }
 0x100   : > { %640 = vmatprep.mubr.bf16.mxu1 %v1689_v30  ;;  %1443 = vmatpush3.bf16.msra.mxu1 %v1595_v14  ;;  %v1596_v14 = vld [vmem:[%s2006_s7 + $0x18] sm:$0xff]  }
 0x101   : > { %1444 = vmatprep.subr.bf16.mxu1 %v1596_v14 }
 0x104   : > { %1445 = vmatpush3.bf16.msra.mxu1 %v1596_v14 }
 0x105   : > { %1446 = vmatprep.subr.bf16.mxu1 %v1597_v15 }
 0x107   : > { %641 = vmatmul.mubr.bf16.gmra.mrb[8].mxu1 %v478_v6 }
 0x108   : > { %650 = vmatprep.mubr.bf16.mxu1 %v1689_v30  ;;  %1447 = vmatpush3.bf16.msra.mxu1 %v1597_v15 }
 0x109   : > { %1448 = vmatprep.subr.bf16.mxu1 %v1598_v16 }
 0x10c   : > { %1449 = vmatpush3.bf16.msra.mxu1 %v1598_v16 }
 0x10d   : > { %1450 = vmatprep.subr.bf16.mxu1 %v1599_v17 }
 0x10f   : > { %651 = vmatmul.mubr.bf16.gmra.mrb[12].mxu1 %v479_v5 }
 0x110   : > { %1451 = vmatpush3.bf16.msra.mxu1 %v1599_v17 }
 0x111   : > { %1452 = vmatprep.subr.bf16.mxu1 %v1600_v18 }
 0x114   : > { %1453 = vmatpush3.bf16.msra.mxu1 %v1600_v18 }
 0x1ca   : > { %v622_v22 = vpop.f32.mrb[0].mxu1 }
 0x1cb   : > { %v623_v23 = vadd.f32 %v622_v22, %v501_v20  ;;  %v624_v24 = vpop.f32.mrb[1].mxu1 }
 0x1cc   : > { %v625_v25 = vadd.f32 %v624_v24, %v505_v21  ;;  %v626_v26 = vpop.f32.mrb[2].mxu1 }
 0x1cd   : > { %v627_v27 = vadd.f32 %v626_v26, %v501_v20  ;;  %v628_v28 = vpop.f32.mrb[3].mxu1  ;;  %v661_v30 = vmax.f32 %v623_v23, 0.0 }
 0x1ce   : > { %v629_v29 = vadd.f32 %v628_v28, %v505_v21  ;;  %v662_v32 = vmax.f32 %v625_v25, 0.0 }
 0x1cf   : > { %v663_v31 = vmax.f32 %v627_v27, 0.0 }
 0x1d0   : > { %v664_v33 = vmax.f32 %v629_v29, 0.0 }
 0x1d1   : > { %v677_v34 = vpack.c.bf16 %v663_v31, %v661_v30 }
 0x1d2   : > { %v678_v35 = vpack.c.bf16 %v664_v33, %v662_v32  ;;  %v632_v36 = vpop.f32.mrb[4].mxu1 }
 0x1d3   : > { %v633_v37 = vadd.f32 %v632_v36, %v501_v20  ;;  %v634_v38 = vpop.f32.mrb[5].mxu1 }
 0x1d4   : > { %v635_v39 = vadd.f32 %v634_v38, %v505_v21  ;;  %v636_v40 = vpop.f32.mrb[6].mxu1  ;;  %852 = vmatprep.mubr.bf16.mxu0 %v678_v35 }
 0x1d5   : > { %v637_v41 = vadd.f32 %v636_v40, %v501_v20  ;;  %v638_v42 = vpop.f32.mrb[7].mxu1  ;;  %853 = vmatmul.mubr.bf16.vlgmr.msra.gmra.mrb[8].mxu0 %v677_v34  ;;  %v665_v44 = vmax.f32 %v633_v37, 0.0 }
 0x1d6   : > { %v639_v43 = vadd.f32 %v638_v42, %v505_v21  ;;  %v666_v46 = vmax.f32 %v635_v39, 0.0 }
 0x1d7   : > { %v667_v45 = vmax.f32 %v637_v41, 0.0 }
 0x1d8   : > { %v668_v47 = vmax.f32 %v639_v43, 0.0 }
 0x1d9   : > { %v679_v48 = vpack.c.bf16 %v667_v45, %v665_v44 }
 0x1da   : > { %v680_v49 = vpack.c.bf16 %v668_v47, %v666_v46  ;;  %v642_v50 = vpop.f32.mrb[8].mxu1 }
 0x1db   : > { %v643_v51 = vadd.f32 %v642_v50, %v501_v20  ;;  %v644_v52 = vpop.f32.mrb[9].mxu1 }
 0x1dc   : > { %v645_v53 = vadd.f32 %v644_v52, %v505_v21  ;;  %v646_v54 = vpop.f32.mrb[10].mxu1  ;;  %860 = vmatprep.mubr.bf16.mxu0 %v680_v49 }
 0x1dd   : > { %v647_v55 = vadd.f32 %v646_v54, %v501_v20  ;;  %v648_v56 = vpop.f32.mrb[11].mxu1  ;;  %861 = vmatmul.mubr.bf16.gmra.mrb[12].mxu0 %v679_v48  ;;  %v669_v58 = vmax.f32 %v643_v51, 0.0 }
 0x1de   : > { %v649_v57 = vadd.f32 %v648_v56, %v505_v21  ;;  %v670_v60 = vmax.f32 %v645_v53, 0.0 }
 0x1df   : > { %v671_v59 = vmax.f32 %v647_v55, 0.0 }
 0x1e0   : > { %v672_v61 = vmax.f32 %v649_v57, 0.0 }
 0x1e1   : > { %v681_v62 = vpack.c.bf16 %v671_v59, %v669_v58 }
 0x1e2   : > { %v682_v63 = vpack.c.bf16 %v672_v61, %v670_v60  ;;  %v652_v0 = vpop.f32.mrb[12].mxu1 }
 0x1e3   : > { %v653_v1 = vadd.f32 %v652_v0, %v501_v20  ;;  %v654_v2 = vpop.f32.mrb[13].mxu1  ;;  %v1339_v0 = vld [vmem:[%s2007_s8] ss:$0 sm:$0xff] }
 0x1e4   : > { %v655_v3 = vadd.f32 %v654_v2, %v505_v21  ;;  %v656_v4 = vpop.f32.mrb[14].mxu1  ;;  %868 = vmatprep.mubr.bf16.mxu0 %v682_v63 }
 0x1e5   : > { %v657_v5 = vadd.f32 %v656_v4, %v501_v20  ;;  %v658_v6 = vpop.f32.mrb[15].mxu1  ;;  %869 = vmatmul.mubr.bf16.gmra.mrb[16].mxu0 %v681_v62  ;;  %v673_v8 = vmax.f32 %v653_v1, 0.0  ;;  %v1322_v20 = vld [vmem:[%s2005_s6] ss:$0 sm:$0xff] }
 0x1e6   : > { %v659_v7 = vadd.f32 %v658_v6, %v505_v21  ;;  %v674_v10 = vmax.f32 %v655_v3, 0.0 }
 0x1e7   : > { %v675_v9 = vmax.f32 %v657_v5, 0.0 }
 0x1e8   : > { %v676_v11 = vmax.f32 %v659_v7, 0.0 }
 0x1e9   : > { %v683_v12 = vpack.c.bf16 %v675_v9, %v673_v8 }
 0x1ea   : > { %v684_v13 = vpack.c.bf16 %v676_v11, %v674_v10 }
 0x1ec   : > { %876 = vmatprep.mubr.bf16.mxu0 %v684_v13 }
 0x1ed   : > { %877 = vmatmul.mubr.bf16.gmra.mrb[20].mxu0 %v683_v12 }
 0x2a8   : > { %v1390_v19 = vpop.f32.mrb[8].mxu0 }
 0x2a9   : > { %v1391_v21 = vpop.f32.mrb[9].mxu0 }
 0x2aa   : > { %v1392_v22 = vadd.f32 %v1391_v21, %v1390_v19  ;;  %v1393_v23 = vpop.f32.mrb[10].mxu0 }
 0x2ab   : > { %v1394_v24 = vpop.f32.mrb[11].mxu0 }
 0x2ac   : > { %v855_v25 = vadd.f32 %v1392_v22, %v1322_v20  ;;  %v1395_v26 = vadd.f32 %v1394_v24, %v1393_v23 }
 0x2ae   : > { %v858_v27 = vadd.f32 %v1395_v26, %v1322_v20  ;;  %v885_v28 = vmax.f32 %v855_v25, 0.0 }
 0x2b0   : > { %v886_v29 = vmax.f32 %v858_v27, 0.0  ;;  %v1396_v30 = vpop.f32.mrb[12].mxu0 }
 0x2b1   : > { %v1397_v31 = vpop.f32.mrb[13].mxu0 }
 0x2b2   : > { %v1398_v32 = vadd.f32 %v1397_v31, %v1396_v30  ;;  %v1399_v33 = vpop.f32.mrb[14].mxu0  ;;  %v893_v34 = vpack.c.bf16 %v886_v29, %v885_v28 }
 0x2b3   : > { %v1400_v35 = vpop.f32.mrb[15].mxu0 }
 0x2b4   : > { %v863_v36 = vadd.f32 %v1398_v32, %v1322_v20  ;;  %v1401_v37 = vadd.f32 %v1400_v35, %v1399_v33  ;;  %1454 = vmatprep.mubr.bf16.mxu1 %v893_v34 }
 0x2b6   : > { %v866_v38 = vadd.f32 %v1401_v37, %v1322_v20  ;;  %v887_v39 = vmax.f32 %v863_v36, 0.0 }
 0x2b8   : > { %v888_v40 = vmax.f32 %v866_v38, 0.0  ;;  %v1402_v41 = vpop.f32.mrb[16].mxu0 }
 0x2b9   : > { %v1403_v42 = vpop.f32.mrb[17].mxu0 }
 0x2ba   : > { %v894_v43 = vpack.c.bf16 %v888_v40, %v887_v39  ;;  %v1404_v44 = vadd.f32 %v1403_v42, %v1402_v41  ;;  %v1405_v45 = vpop.f32.mrb[18].mxu0 }
 0x2bb   : > { %v1406_v46 = vpop.f32.mrb[19].mxu0 }
 0x2bc   : > { %v871_v47 = vadd.f32 %v1404_v44, %v1322_v20  ;;  %v1407_v48 = vadd.f32 %v1406_v46, %v1405_v45  ;;  %1455 = vmatmul.mubr.bf16.vlgmr.msra.gmra.mrb[16].mxu1 %v894_v43 }
 0x2be   : > { %v874_v49 = vadd.f32 %v1407_v48, %v1322_v20  ;;  %v889_v50 = vmax.f32 %v871_v47, 0.0 }
 0x2c0   : > { %v890_v51 = vmax.f32 %v874_v49, 0.0  ;;  %v1408_v52 = vpop.f32.mrb[20].mxu0 }
 0x2c1   : > { %v1409_v53 = vpop.f32.mrb[21].mxu0 }
 0x2c2   : > { %v1410_v54 = vadd.f32 %v1409_v53, %v1408_v52  ;;  %v1411_v55 = vpop.f32.mrb[22].mxu0  ;;  %v895_v56 = vpack.c.bf16 %v890_v51, %v889_v50 }
 0x2c3   : > { %v1412_v57 = vpop.f32.mrb[23].mxu0 }
 0x2c4   : > { %v879_v58 = vadd.f32 %v1410_v54, %v1322_v20  ;;  %v1413_v59 = vadd.f32 %v1412_v57, %v1411_v55  ;;  %1458 = vmatprep.mubr.bf16.mxu1 %v895_v56 }
 0x2c6   : > { %v882_v60 = vadd.f32 %v1413_v59, %v1322_v20  ;;  %v891_v61 = vmax.f32 %v879_v58, 0.0 }
 0x2c8   : > { %v892_v62 = vmax.f32 %v882_v60, 0.0 }
 0x2ca   : > { %v896_v63 = vpack.c.bf16 %v892_v62, %v891_v61 }
 0x2cc   : > { %1459 = vmatmul.mubr.bf16.gmra.mrb[20].mxu1 %v896_v63 }
 0x38f   : > { %v1456_v1 = vpop.f32.mrb[16].mxu1 }
 0x390   : > { %v1011_v2 = vadd.f32 %v1456_v1, %v1339_v0  ;;  %v1002_v3 = vpop.f32.mrb[17].mxu1 }
 0x391   : > { %v1003_v4 = vadd.f32 %v1339_v0, %v1002_v3  ;;  %v1457_v5 = vpop.f32.mrb[18].mxu1 }
 0x392   : > { %v1035_v6 = vmax.f32 %v1011_v2, 0.0  ;;  %v1014_v7 = vadd.f32 %v1457_v5, %v1339_v0  ;;  %v1005_v8 = vpop.f32.mrb[19].mxu1 }
 0x393   : > { %v1033_v9 = vmax.f32 %v1003_v4, 0.0  ;;  %v1006_v10 = vadd.f32 %v1339_v0, %v1005_v8 }
 0x394   : > { %1043 = vst.msk [vmem:[%s1920_s19 + $0x10] sm:$0xff] %vm390_vm0, %v1035_v6  ;;  %v1036_v11 = vmax.f32 %v1014_v7, 0.0 }
 0x395   : > { %1041 = vst.msk [vmem:[%s1920_s19] sm:$0xff] %vm390_vm0, %v1033_v9  ;;  %v1034_v12 = vmax.f32 %v1006_v10, 0.0 }
 0x396   : > { %1044 = vst.msk [vmem:[%s1920_s19 + $0x18] sm:$0xff] %vm390_vm0, %v1036_v11 }
 0x397   : > { %1042 = vst.msk [vmem:[%s1920_s19 + $0x8] sm:$0xff] %vm390_vm0, %v1034_v12 }
 0x39f   : > { %v1460_v13 = vpop.f32.mrb[20].mxu1 }
 0x3a0   : > { %v1027_v14 = vadd.f32 %v1460_v13, %v1339_v0  ;;  %v1018_v15 = vpop.f32.mrb[21].mxu1 }
 0x3a1   : > { %v1019_v16 = vadd.f32 %v1339_v0, %v1018_v15  ;;  %v1461_v17 = vpop.f32.mrb[22].mxu1  ;;  %1055 = sbr.rel (!%p1765_p4) target bundleno = 985 (0x3d9), region = 60 }
 0x3a2   : > { %v1039_v18 = vmax.f32 %v1027_v14, 0.0  ;;  %v1030_v19 = vadd.f32 %v1461_v17, %v1339_v0  ;;  %v1021_v20 = vpop.f32.mrb[23].mxu1 }
 0x3a3   : > { %v1037_v21 = vmax.f32 %v1019_v16, 0.0  ;;  %v1022_v22 = vadd.f32 %v1339_v0, %v1021_v20 }
 0x3a4   : > { %1047 = vst.msk [vmem:[%s1920_s19 + $0x30] sm:$0xff] %vm390_vm0, %v1039_v18  ;;  %v1040_v23 = vmax.f32 %v1030_v19, 0.0 }
 0x3a5   : > { %1045 = vst.msk [vmem:[%s1920_s19 + $0x20] sm:$0xff] %vm390_vm0, %v1037_v21  ;;  %v1038_v24 = vmax.f32 %v1022_v22, 0.0 }
 0x3a6   : > { %1048 = vst.msk [vmem:[%s1920_s19 + $0x38] sm:$0xff] %vm390_vm0, %v1040_v23 }
 0x3a7   : > { %1046 = vst.msk [vmem:[%s1920_s19 + $0x28] sm:$0xff] %vm390_vm0, %v1038_v24 }
 0x3a8   : > { %s2017_s30 = smov (!%p1058_p8, %s1057_s30), 8 }
 0x3a9   : > { %s1350_s25 = sshll.u32 %s2017_s30, 7 }
 0x3aa   : > { %p1353_p9 = scmp.eq.s32.totalorder %s1350_s25, 0 }
 0x3ab   : > { %s1951_s26 = sshrl.u32 (!%p1353_p9), %s2017_s30, 3 }
 0x3ac   : > { %1066 = sbr.rel (%p1353_p9) target bundleno = 985 (0x3d9), region = 64  ;;  %p1354_p10 = scmp.le.s32.totalorder (!%p1353_p9), %s1951_s26, 0 }
 0x3b3   : > { %1248 = sbr.rel (%p1354_p10) target bundleno = 964 (0x3c4), region = 140  ;;  %s2010_s12 = smov (!%p1354_p10), %s1945_s24 }
 0x3b4   : > { %s2011_s17 = smov (!%p1354_p10), %s1920_s19  ;;  %s1960_s20 = smov (!%p1354_p10), 0  }
 0x3b5   : > { %s1962_s27 = smov (!%p1354_p10), 0  }
 0x3ba LB: >> { %v1142_v25 = vld [vmem:[%s1663_s17] sm:$0xff]  ;;  %v1144_v26 = vld [vmem:[%s1663_s17 + $0x8] sm:$0xff]  ;;  %v1146_v27 = vld [vmem:[%s1663_s17 + $0x10] sm:$0xff]  ;;  %s1158_s28 = sadd.s32 1, %s1667_s20  ;;  %s1136_s27 = sadd.s32 1, %s1671_s27   ;;  %s1671_s27 = sphi %s1962_s27, %s1136_s27   ;;  %s1667_s20 = sphi %s1960_s20, %s2012_s20   ;;  %s1663_s17 = sphi %s2011_s17, %s1163_s17   ;;  %s1659_s12 = sphi %s2010_s12, %s1164_s12  }
 0x3bb   : >> { %1143 = vst [vmem:[%s1659_s12] sm:$0xff] %v1142_v25  ;;  %1145 = vst [vmem:[%s1659_s12 + $0x8] sm:$0xff] %v1144_v26  ;;  %v1148_v28 = vld [vmem:[%s1663_s17 + $0x18] sm:$0xff]  ;;  %v1150_v29 = vld [vmem:[%s1663_s17 + $0x20] sm:$0xff]  ;;  %p1159_p11 = scmp.ge.s32.totalorder %s1158_s28, %s1951_s26  ;;  %p1135_p12 = scmp.ge.s32.totalorder %s1136_s27, %s1951_s26 }
 0x3bc   : >> { %1147 = vst [vmem:[%s1659_s12 + $0x10] sm:$0xff] %v1146_v27  ;;  %v1152_v30 = vld [vmem:[%s1663_s17 + $0x28] sm:$0xff]  ;;  %1149 = vst [vmem:[%s1659_s12 + $0x18] sm:$0xff] %v1148_v28  ;;  %v1154_v31 = vld [vmem:[%s1663_s17 + $0x30] sm:$0xff] }
 0x3bd   : >> { %1151 = vst [vmem:[%s1659_s12 + $0x20] sm:$0xff] %v1150_v29  ;;  %1153 = vst [vmem:[%s1659_s12 + $0x28] sm:$0xff] %v1152_v30  ;;  %v1156_v32 = vld [vmem:[%s1663_s17 + $0x38] sm:$0xff]  ;;  %s2019_s28 = smov (%p1159_p11, %s1158_s28), 0  ;;  %1138 = sbr.rel (!%p1135_p12) target bundleno = 954 (0x3ba), region = 146 }
 0x3be   : >> { %1155 = vst [vmem:[%s1659_s12 + $0x30] sm:$0xff] %v1154_v31  ;;  %1157 = vst [vmem:[%s1659_s12 + $0x38] sm:$0xff] %v1156_v32  ;;  %s1355_s29 = sshll.u32 %s2019_s28, 6  ;;  %s2012_s20 = smov %s2019_s28 }
 0x3bf   : >> { %s1163_s17 = scalar_lea.vmem %s1920_s19, %s1355_s29 [#allocation2]   ;;  %s1164_s12 = scalar_lea.vmem %s1945_s24, %s1355_s29  }
 0x3c4 PF: > { %s1981_s11 = sand.u32 7, %s2017_s30   ;;  %s1366_s14 = sshll.u32 %s1951_s26, 6 }
 0x3c5   : > { %s1169_s15 = scalar_lea.vmem %s1920_s19, %s1366_s14 [#allocation2]   ;;  %s1171_s18 = scalar_lea.vmem %s1945_s24, %s1366_s14  }
 0x3c6   : > { %p1360_p13 = scmp.le.s32.totalorder %s1981_s11, 0 }
 0x3c7   : > { %s1673_s22 = smov (!%p1360_p13), %s1171_s18   ;;  %s1677_s21 = smov (!%p1360_p13), %s1169_s15  }
 0x3c8   : > { %1262 = sbr.rel (%p1360_p13) target bundleno = 985 (0x3d9), region = 151  ;;  %s1681_s23 = smov (!%p1360_p13), 0  }
 0x3c9   : > { %s1685_s25 = smov (!%p1360_p13), 0  }
 0x3cf LB: >> { %v1181_v33 = vld [vmem:[%s1679_s21] sm:$0xff]  ;;  %s1183_s30 = sadd.s32 1, %s1683_s23  ;;  %s1175_s25 = sadd.s32 1, %s1687_s25   ;;  %s1687_s25 = sphi %s1685_s25, %s1175_s25   ;;  %s1683_s23 = sphi %s1681_s23, %s1682_s23   ;;  %s1679_s21 = sphi %s1677_s21, %s1188_s21   ;;  %s1675_s22 = sphi %s1673_s22, %s1189_s22  }
 0x3d0   : >> { %1182 = vst [vmem:[%s1675_s22] sm:$0xff] %v1181_v33  ;;  %p1184_p0 = scmp.ge.s32.totalorder %s1183_s30, %s1981_s11  ;;  %p1174_p1 = scmp.ge.s32.totalorder %s1175_s25, %s1981_s11 }
 0x3d2   : >> { %s2021_s30 = smov (%p1184_p0, %s1183_s30), 0  ;;  %1177 = sbr.rel (!%p1174_p1) target bundleno = 975 (0x3cf), region = 157 }
 0x3d3   : >> { %s1361_s19 = sshll.u32 %s2021_s30, 3  ;;  %s1682_s23 = smov %s2021_s30  }
 0x3d4   : >> { %s1188_s21 = scalar_lea.vmem %s1169_s15, %s1361_s19 [#allocation2]   ;;  %s1189_s22 = scalar_lea.vmem %s1171_s18, %s1361_s19  }
 0x3d9 PF: > { %p16_p2 = scmp.ge.s32.totalorder %s1755_s13, 6   ;;  %s2013_s30 = smov %s1651_s10 }
 0x3da   : > { %s2014_s10 = smov %s1763_s16  ;;  %s2015_s11 = smov %s1755_s13 }
 0x3db   :  { %18 = sbr.rel (!%p16_p2) target bundleno = 2 (0x2), region = 168 }

</bundles_post_ra>
